<compile_context>
chip_gen: v7x
topology: tpu7x:2x2x1
jax: 0.10.0
libtpu: 0.0.40
codegen_flags: <defaults>
</compile_context>

<pallas_src>
import jax
import jax.numpy as jnp
from jax.experimental import pallas as pl
from jax.experimental.pallas import tpu as pltpu


def bilinear_score_kernel(q_ref, p_ref, w_ref, s_ref, o_ref):
    """One batch tile, lane-packed.

    q_ref, p_ref : (tbp, P*D)  P consecutive batch rows packed along lanes
    w_ref        : (P*D, P*D)  block-diag(W, ..., W)        (grid-invariant)
    s_ref        : (P*D, P)    0/1 segment-sum matrix        (grid-invariant)
    o_ref        : (tbp, P)    scores; row r, col j -> batch row P*r + j
    """
    q = q_ref[...].astype(jnp.float32)          # matches torch .to(float32)
    p = p_ref[...].astype(jnp.float32)
    # (q @ W) for all P packed rows in one MXU matmul (block-diagonal weight).
    qw = jnp.dot(q, w_ref[...], preferred_element_type=jnp.float32)
    # Row-wise dot(q@W, p): elementwise product on the VPU, then the segmented
    # sum as a second small MXU matmul -> no XLU cross-lane reduce / relayout.
    o_ref[...] = jnp.dot(qw * p, s_ref[...], preferred_element_type=jnp.float32)


def _round_up(x, m):
    return ((x + m - 1) // m) * m


def _pick_block_rows(D, P, in_itemsize,
                     vmem_budget=13 * 1024 * 1024, max_rows=8192):
    """Largest batch tile (logical rows, multiple of 8*P, capped) whose
    double-buffered q/p tiles + resident W_big/selection + the (lane-padded)
    output block fit a conservative VMEM budget (safe under default scoped
    limits on v5e/v6e/v7x)."""
    PD = P * D
    const_cost = 2 * PD * PD * 4 + 2 * PD * P * 4       # W_big + selection (x2 bufs)
    avail = max(vmem_budget - const_cost, 1 * 1024 * 1024)
    # per logical batch row: 2 inputs x 2 buffers x D elems, plus the output
    # block (lane-padded to 128, f32, double-buffered) amortised over P rows.
    per_row = 4 * D * in_itemsize + (2 * 128 * 4) // P
    rows = avail // per_row
    align = 8 * P
    rows = max(align, min(max_rows, (rows // align) * align))
    return int(rows)


def full_rank_bilinear_scores(query_embed, passage_embed, W, *, block_rows=None):
    """query_embed, passage_embed: (B, D); W: (D, D) -> scores (B,) float32."""
    B, D = query_embed.shape
    assert passage_embed.shape == (B, D)
    assert W.shape == (D, D)

    in_itemsize = jnp.dtype(query_embed.dtype).itemsize

    # Pack P consecutive batch rows along the 128-wide lane axis.
    P = max(1, 128 // D)
    PD = P * D
    align = 8 * P                       # packed rows must be a multiple of 8

    if block_rows is None:
        block_rows = _pick_block_rows(D, P, in_itemsize)

    if B <= block_rows:
        tb = _round_up(max(B, 1), align)          # single grid step
    else:
        tb = max(align, (block_rows // align) * align)

    num_tiles = pl.cdiv(B, tb)
    b_pad = num_tiles * tb
    if b_pad != B:
        pad = ((0, b_pad - B), (0, 0))
        query_embed = jnp.pad(query_embed, pad)
        passage_embed = jnp.pad(passage_embed, pad)

    # Contiguous reshape (free for row-major arrays): (b_pad, D) -> (b_pad/P, P*D)
    q_packed = query_embed.reshape(b_pad // P, PD)
    p_packed = passage_embed.reshape(b_pad // P, PD)

    W32 = W.astype(jnp.float32)
    # block-diag(W, ..., W): packed matmul computes q@W per 128-lane segment.
    w_big = jnp.kron(jnp.eye(P, dtype=jnp.float32), W32)           # (PD, PD)
    # Segment-sum selection: sel[e, j] = 1 iff e // D == j.
    sel = jnp.kron(jnp.eye(P, dtype=jnp.float32),
                   jnp.ones((D, 1), jnp.float32))                  # (PD, P)

    tbp = tb // P
    bp = b_pad // P

    cost = pl.CostEstimate(
        flops=2 * bp * PD * PD + 2 * bp * PD * P + b_pad * D,
        transcendentals=0,
        bytes_accessed=2 * b_pad * D * in_itemsize
        + (PD * PD + PD * P) * 4 + bp * P * 4,
    )

    out = pl.pallas_call(
        bilinear_score_kernel,
        out_shape=jax.ShapeDtypeStruct((bp, P), jnp.float32),
        grid=(num_tiles,),
        in_specs=[
            pl.BlockSpec((tbp, PD), lambda i: (i, 0)),   # q tile (pipelined)
            pl.BlockSpec((tbp, PD), lambda i: (i, 0)),   # p tile (pipelined)
            pl.BlockSpec((PD, PD), lambda i: (0, 0)),    # W_big (resident)
            pl.BlockSpec((PD, P), lambda i: (0, 0)),     # selection (resident)
        ],
        out_specs=pl.BlockSpec((tbp, P), lambda i: (i, 0)),
        compiler_params=pltpu.CompilerParams(
            # independent batch tiles -> shard across TCs on v7x megacore
            dimension_semantics=("parallel",),
            vmem_limit_bytes=32 * 1024 * 1024,
        ),
        cost_estimate=cost,
    )(q_packed, p_packed, w_big, sel)

    return out.reshape(b_pad)[:B]


def xavier_uniform(key, shape, dtype=jnp.float32):
    # Matches torch.nn.init.xavier_uniform_ for a 2-D tensor:
    # bound = sqrt(6 / (fan_in + fan_out))
    fan_in, fan_out = shape[1], shape[0]
    bound = (6.0 / (fan_in + fan_out)) ** 0.5
    return jax.random.uniform(key, shape, dtype=dtype, minval=-bound, maxval=bound)


def _reference(query_embed, passage_embed, W):
    q = query_embed.astype(jnp.float32)
    p = passage_embed.astype(jnp.float32)
    qw = jnp.matmul(q, W.astype(jnp.float32), precision=jax.lax.Precision.HIGHEST)
    return jnp.sum(qw * p, axis=1)


if __name__ == "__main__":
    key = jax.random.PRNGKey(0)
    k_w, k_q, k_p = jax.random.split(key, 3)

    def check(B, D, W, kq, kp, **kw):
        q = jax.random.normal(kq, (B, D), dtype=jnp.float32)
        p = jax.random.normal(kp, (B, D), dtype=jnp.float32)
        s = jax.block_until_ready(full_rank_bilinear_scores(q, p, W, **kw))
        assert s.shape == (B,)
        ref = _reference(q, p, W)
        assert jnp.allclose(s, ref, rtol=1e-5, atol=1e-4)

    # Module spec: config['embedding_dim'] = 32.
    D = 32
    W = xavier_uniform(k_w, (D, D))

    # 1) Spec-sized case: B=8, D=32 (single tile, lane packing P=4).
    check(8, D, W, k_q, k_p)

    # 2) Batch not a multiple of the packing/alignment -> zero-padding path.
    check(20, D, W, jax.random.fold_in(k_q, 1), jax.random.fold_in(k_p, 1))

    # 3) Multi-tile path (grid > 1, parallel batch axis, padded final tile).
    check(300, D, W, jax.random.fold_in(k_q, 2), jax.random.fold_in(k_p, 2),
          block_rows=128)

    # 4) D that only partially fills the 128 lanes (P=2, P*D=96).
    D2 = 48
    W2 = xavier_uniform(jax.random.fold_in(k_w, 1), (D2, D2))
    check(24, D2, W2, jax.random.fold_in(k_q, 3), jax.random.fold_in(k_p, 3))

    # 5) D > 128 -> no packing (P=1); reduction still runs on the MXU.
    D3 = 160
    W3 = xavier_uniform(jax.random.fold_in(k_w, 2), (D3, D3))
    check(40, D3, W3, jax.random.fold_in(k_q, 4), jax.random.fold_in(k_p, 4))

    print("KERNEL_OK")
</pallas_src>

<mosaic_0001>
module attributes {stable_mosaic.version = 11 : i64} {
  func.func @bilinear_score_kernel(%arg0: i32, %arg1: memref<8x128xf32, #tpu.memory_space<vmem>>, %arg2: memref<8x128xf32, #tpu.memory_space<vmem>>, %arg3: memref<128x128xf32, #tpu.memory_space<vmem>>, %arg4: memref<128x4xf32, #tpu.memory_space<vmem>>, %arg5: memref<8x4xf32, #tpu.memory_space<vmem>>) attributes {dimension_semantics = [#tpu.dimension_semantics<parallel>], iteration_bounds = array<i64: 1>, scalar_prefetch = 0 : i64, scratch_operands = 0 : i64, tpu.core_type = #tpu.core_type<tc>, window_params = [{transform_indices = @transform_0, window_bounds = array<i64: 8, 128>}, {transform_indices = @transform_1, window_bounds = array<i64: 8, 128>}, {pipeline_mode = #tpu.pipeline_mode<synchronous>, transform_indices = @transform_2, window_bounds = array<i64: 128, 128>}, {pipeline_mode = #tpu.pipeline_mode<synchronous>, transform_indices = @transform_3, window_bounds = array<i64: 128, 4>}, {transform_indices = @transform_4, window_bounds = array<i64: 8, 4>}]} {
    %c0 = arith.constant 0 : index
    %c0_0 = arith.constant 0 : index
    %0 = vector.load %arg1[%c0, %c0_0] : memref<8x128xf32, #tpu.memory_space<vmem>>, vector<8x128xf32>
    %c0_1 = arith.constant 0 : index
    %c0_2 = arith.constant 0 : index
    %1 = vector.load %arg2[%c0_1, %c0_2] : memref<8x128xf32, #tpu.memory_space<vmem>>, vector<8x128xf32>
    %c0_3 = arith.constant 0 : index
    %c0_4 = arith.constant 0 : index
    %2 = vector.load %arg3[%c0_3, %c0_4] : memref<128x128xf32, #tpu.memory_space<vmem>>, vector<128x128xf32>
    %cst = arith.constant dense<0.000000e+00> : vector<8x128xf32>
    %3 = tpu.matmul %0, %2, %cst {dimension_numbers = #tpu.dot_dimension_numbers<[1], [0], [0], [1], [0, 0, 1, 1], [], []>} : vector<8x128xf32>, vector<128x128xf32>, vector<8x128xf32> -> vector<8x128xf32>
    %4 = arith.mulf %3, %1 : vector<8x128xf32>
    %c0_5 = arith.constant 0 : index
    %c0_6 = arith.constant 0 : index
    %5 = vector.load %arg4[%c0_5, %c0_6] : memref<128x4xf32, #tpu.memory_space<vmem>>, vector<128x4xf32>
    %cst_7 = arith.constant dense<0.000000e+00> : vector<8x4xf32>
    %6 = tpu.matmul %4, %5, %cst_7 {dimension_numbers = #tpu.dot_dimension_numbers<[1], [0], [0], [1], [0, 0, 1, 1], [], []>} : vector<8x128xf32>, vector<128x4xf32>, vector<8x4xf32> -> vector<8x4xf32>
    %c0_8 = arith.constant 0 : index
    %c0_9 = arith.constant 0 : index
    %7 = vector.load %arg5[%c0_8, %c0_9] : memref<8x4xf32, #tpu.memory_space<vmem>>, vector<8x4xf32>
    tpu.vector_store %arg5[%c0_8, %c0_9], %6 {strides = array<i32>} : memref<8x4xf32, #tpu.memory_space<vmem>>, vector<8x4xf32>,
    return
  }
  func.func @transform_0(%arg0: i32) -> (i32, i32) {
    %c0_i32 = arith.constant 0 : i32
    %c0_i32_0 = arith.constant 0 : i32
    return %arg0, %c0_i32 : i32, i32
  }
  func.func @transform_1(%arg0: i32) -> (i32, i32) {
    %c0_i32 = arith.constant 0 : i32
    %c0_i32_0 = arith.constant 0 : i32
    return %arg0, %c0_i32 : i32, i32
  }
  func.func @transform_2(%arg0: i32) -> (i32, i32) {
    %c0_i32 = arith.constant 0 : i32
    %c0_i32_0 = arith.constant 0 : i32
    %c0_i32_1 = arith.constant 0 : i32
    return %c0_i32, %c0_i32_0 : i32, i32
  }
  func.func @transform_3(%arg0: i32) -> (i32, i32) {
    %c0_i32 = arith.constant 0 : i32
    %c0_i32_0 = arith.constant 0 : i32
    %c0_i32_1 = arith.constant 0 : i32
    return %c0_i32, %c0_i32_0 : i32, i32
  }
  func.func @transform_4(%arg0: i32) -> (i32, i32) {
    %c0_i32 = arith.constant 0 : i32
    %c0_i32_0 = arith.constant 0 : i32
    return %arg0, %c0_i32 : i32, i32
  }
}

</mosaic_0001>

<bundles_post_ra>
// kernel: tpu_custom_call.1
= control target key start
LH: loop header
LB: loop body
LE: loop exit
PB: predicated region body
PF: predicated region fallthrough
CT: control target
= control target key end

     0   :  { %9 = vsyncpa [#allocation3], 0  ;;  %s391_s15 = smov [#allocation2]   ;;  %s550_s0 = inlined_call_operand.vmem [shape: f32[8,128], index: 0, kind: input, shape index: {}]   ;;  %s551_s1 = inlined_call_operand.hbm [shape: f32[8,128], index: 1, kind: input, shape index: {}]   ;;  %s552_s2 = inlined_call_operand.vmem [shape: f32[128,128], index: 2, kind: input, shape index: {}]   ;;  %s553_s3 = inlined_call_operand.vmem [shape: f32[128,4], index: 3, kind: input, shape index: {}]   ;;  %s554_s4 = inlined_call_operand.vmem [shape: f32[8,4], index: 4, kind: output, shape index: {}]  }
   0x1   :  { %s18_s16 = sshll.u32 %s391_s15, 4  ;;  %s367_s19 = scalar_lea.hbm %s551_s1, 128  ;;  %s19_s16 = int_to_ptr.vmem [resolvable:$true] %s18_s16 }
   0x2   :  { %p368_p0 = scmp.ne.s32.totalorder %s551_s1, %s367_s19  ;;  %p371_p1 = scmp.lt.u32.totalorder %s367_s19, %s551_s1 }
   0x4   :  { %p373_p2 = pnand %p371_p1, %p368_p0 }
   0x6   :  { %376 = shalt.err (!%p373_p2)
}
   0x7   :  { %s377_s24 = scalar_lea.vmem %s19_s16, 128  ;;  %p382_p4 = scmp.lt.s32.totalorder %s19_s16, %s19_s16 }
   0x8   :  { %p378_p3 = scmp.ne.s32.totalorder %s19_s16, %s377_s24  ;;  %p383_p5 = scmp.lt.s32.totalorder %s377_s24, %s377_s24 }
   0xa   :  { %p384_p6 = por %p383_p5, %p382_p4 }
   0xc   :  { %p385_p7 = pnand %p384_p6, %p378_p3 }
   0xe   :  { %388 = shalt.err (!%p385_p7)
}
   0xf   :  { %21 = dma.hbm_to_vmem [thread:$0]  %s551_s1, 128, %s19_s16, [#allocation3]  }
  0x10   :  { %389 = dma.done.wait [#allocation3], 128  }
  0x11   :  { %390 = vsyncadd [#allocation3], 4294967168  ;;  %v392_v0 = vmov 0.0|0.0   ;;  %vm393_vm0 = vmmov 0   ;;  %v394_v1 = vmov 0.0   ;;  %v31_v2 = vld [vmem:[%s552_s2] sm:$0xff] }
  0x12   :  { %315 = vmatprep.subr.bf16.mxu0 %v392_v0  ;;  %277 = vmatprep.mubr.msk.f32.mxu0 %vm393_vm0, %v394_v1  ;;  %v32_v3 = vld [vmem:[%s552_s2 + $0x8] sm:$0xff]  ;;  %v33_v4 = vld [vmem:[%s552_s2 + $0x10] sm:$0xff]  ;;  %v34_v6 = vld [vmem:[%s552_s2 + $0x18] sm:$0xff]  ;;  %vm204_vm1 = vcmask 31744  }
  0x13   :  { %339 = vmatprep.subr.bf16.mxu1 %v392_v0  ;;  %312 = vmatprep.mubr.msk.f32.mxu1 %vm393_vm0, %v394_v1  ;;  %v316_v5 = vpack.c.bf16 %v32_v3, %v31_v2  ;;  %v319_v7 = vpack.c.bf16 %v34_v6, %v33_v4  ;;  %v35_v8 = vld [vmem:[%s552_s2 + $0x20] sm:$0xff]  ;;  %v36_v9 = vld [vmem:[%s552_s2 + $0x28] sm:$0xff]  ;;  %v120_v12 = vld [vmem:[%s553_s3 + $0x10] sm:$0xff] }
  0x14   :  { %v118_v10 = vld [vmem:[%s553_s3] sm:$0xff]  ;;  %v119_v11 = vld [vmem:[%s553_s3 + $0x8] sm:$0xff]  ;;  %v121_v13 = vld [vmem:[%s553_s3 + $0x18] sm:$0xff]  ;;  %v322_v14 = vpack.c.bf16 %v36_v9, %v35_v8 }
  0x15   :  { %317 = vmatpush3.bf16.msra.mxu0 %v316_v5  ;;  %v340_v15 = vpack.c.bf16 %v119_v11, %v118_v10  ;;  %v37_v16 = vld [vmem:[%s552_s2 + $0x30] sm:$0xff]  ;;  %v38_v17 = vld [vmem:[%s552_s2 + $0x38] sm:$0xff]  ;;  %v343_v18 = vpack.c.bf16 %v121_v13, %v120_v12  ;;  %v122_v19 = vld [vmem:[%s553_s3 + $0x20] sm:$0xff] }
  0x16   :  { %318 = vmatprep.subr.bf16.mxu0 %v392_v0  ;;  %v123_v20 = vld [vmem:[%s553_s3 + $0x28] sm:$0xff]  ;;  %v325_v21 = vpack.c.bf16 %v38_v17, %v37_v16  ;;  %v39_v22 = vld [vmem:[%s552_s2 + $0x40] sm:$0xff]  ;;  %v124_v25 = vld [vmem:[%s553_s3 + $0x30] sm:$0xff] }
  0x17   :  { %341 = vmatpush3.bf16.msra.mxu1 %v340_v15  ;;  %v40_v23 = vld [vmem:[%s552_s2 + $0x48] sm:$0xff]  ;;  %v346_v24 = vpack.c.bf16 %v123_v20, %v122_v19  ;;  %v125_v26 = vld [vmem:[%s553_s3 + $0x38] sm:$0xff]  ;;  %v41_v28 = vld [vmem:[%s552_s2 + $0x50] sm:$0xff] }
  0x18   :  { %342 = vmatprep.subr.bf16.mxu1 %v392_v0  ;;  %v328_v27 = vpack.c.bf16 %v40_v23, %v39_v22  ;;  %v42_v29 = vld [vmem:[%s552_s2 + $0x58] sm:$0xff]  ;;  %v349_v30 = vpack.c.bf16 %v125_v26, %v124_v25  ;;  %v126_v31 = vld [vmem:[%s553_s3 + $0x40] sm:$0xff]  ;;  %v127_v32 = vld [vmem:[%s553_s3 + $0x48] sm:$0xff] }
  0x19   :  { %320 = vmatpush3.bf16.msra.mxu0 %v319_v7  ;;  %v331_v33 = vpack.c.bf16 %v42_v29, %v41_v28  ;;  %v43_v34 = vld [vmem:[%s552_s2 + $0x60] sm:$0xff]  ;;  %v44_v35 = vld [vmem:[%s552_s2 + $0x68] sm:$0xff]  ;;  %v352_v36 = vpack.c.bf16 %v127_v32, %v126_v31  ;;  %v128_v37 = vld [vmem:[%s553_s3 + $0x50] sm:$0xff] }
  0x1a   :  { %321 = vmatprep.subr.bf16.mxu0 %v392_v0  ;;  %v129_v38 = vld [vmem:[%s553_s3 + $0x58] sm:$0xff]  ;;  %v334_v39 = vpack.c.bf16 %v44_v35, %v43_v34  ;;  %v45_v40 = vld [vmem:[%s552_s2 + $0x70] sm:$0xff]  ;;  %v130_v43 = vld [vmem:[%s553_s3 + $0x60] sm:$0xff] }
  0x1b   :  { %344 = vmatpush3.bf16.msra.mxu1 %v343_v18  ;;  %v46_v41 = vld [vmem:[%s552_s2 + $0x78] sm:$0xff]  ;;  %v355_v42 = vpack.c.bf16 %v129_v38, %v128_v37  ;;  %v131_v44 = vld [vmem:[%s553_s3 + $0x68] sm:$0xff]  ;;  %v29_v47 = vld [vmem:[%s550_s0] sm:$0xff] }
  0x1c   :  { %345 = vmatprep.subr.bf16.mxu1 %v392_v0  ;;  %v337_v45 = vpack.c.bf16 %v46_v41, %v45_v40  ;;  %v358_v46 = vpack.c.bf16 %v131_v44, %v130_v43  ;;  %v132_v48 = vld [vmem:[%s553_s3 + $0x70] sm:$0xff]  ;;  %v133_v49 = vld [vmem:[%s553_s3 + $0x78] sm:$0xff]  ;;  %v30_v51 = vld [vmem:[#allocation2] sm:$0xff] }
  0x1d   :  { %323 = vmatpush3.bf16.msra.mxu0 %v322_v14  ;;  %v361_v50 = vpack.c.bf16 %v133_v49, %v132_v48 }
  0x1e   :  { %324 = vmatprep.subr.bf16.mxu0 %v392_v0 }
  0x1f   :  { %347 = vmatpush3.bf16.msra.mxu1 %v346_v24 }
  0x20   :  { %348 = vmatprep.subr.bf16.mxu1 %v392_v0 }
  0x21   :  { %326 = vmatpush3.bf16.msra.mxu0 %v325_v21 }
  0x22   :  { %327 = vmatprep.subr.bf16.mxu0 %v392_v0 }
  0x23   :  { %350 = vmatpush3.bf16.msra.mxu1 %v349_v30 }
  0x24   :  { %351 = vmatprep.subr.bf16.mxu1 %v392_v0 }
  0x25   :  { %329 = vmatpush3.bf16.msra.mxu0 %v328_v27 }
  0x26   :  { %330 = vmatprep.subr.bf16.mxu0 %v392_v0 }
  0x27   :  { %353 = vmatpush3.bf16.msra.mxu1 %v352_v36 }
  0x28   :  { %354 = vmatprep.subr.bf16.mxu1 %v392_v0 }
  0x29   :  { %332 = vmatpush3.bf16.msra.mxu0 %v331_v33 }
  0x2a   :  { %333 = vmatprep.subr.bf16.mxu0 %v392_v0 }
  0x2b   :  { %356 = vmatpush3.bf16.msra.mxu1 %v355_v42 }
  0x2c   :  { %357 = vmatprep.subr.bf16.mxu1 %v392_v0 }
  0x2d   :  { %335 = vmatpush3.bf16.msra.mxu0 %v334_v39 }
  0x2e   :  { %336 = vmatprep.subr.bf16.mxu0 %v392_v0 }
  0x2f   :  { %359 = vmatpush3.bf16.msra.mxu1 %v358_v46 }
  0x30   :  { %360 = vmatprep.subr.bf16.mxu1 %v392_v0 }
  0x31   :  { %338 = vmatpush3.bf16.msra.mxu0 %v337_v45 }
  0x33   :  { %362 = vmatpush3.bf16.msra.mxu1 %v361_v50 }
  0x34   :  { %278 = vmatmul.mubr.f32.vlgmr.msra.gmra.mrb[0].mxu0 %v29_v47 }
 0x107   :  { %v113_v52 = vpop.f32.mrb[0].mxu0 }
 0x108   :  { %v117_v53 = vmul.f32 %v113_v52, %v30_v51  ;;  %v279_v54 = vpop.f32.mrb[1].mxu0 }
 0x10a   :  { %313 = vmatmul.mubr.f32.vlgmr.msra.gmra.mrb[0].mxu1 %v117_v53 }
 0x1dd   :  { %v200_v55 = vpop.f32.mrb[0].mxu1 }
 0x1de   :  { %205 = vst.msk [vmem:[%s554_s4] sm:$0xff] %vm204_vm1, %v200_v55  ;;  %v314_v56 = vpop.f32.mrb[1].mxu1 }
 0x1df   :  { %210 = vsyncpa [#allocation3], 1 }

</bundles_post_ra>
